<compile_context>
chip_gen: v7x
topology: tpu7x:2x2x1
jax: 0.10.0
libtpu: 0.0.40
codegen_flags: <defaults>
</compile_context>

<pallas_src>
import jax
import jax.numpy as jnp
import numpy as np
from jax.experimental import pallas as pl
from jax.experimental.pallas import tpu as pltpu


def sin_scale_kernel(x_ref, s_ref, o_ref):
    # x_ref: (TR, TL) tile; s_ref: (TR, 1) per-row scale (broadcast over lanes).
    o_ref[...] = jnp.sin(x_ref[...] * s_ref[...])


def _pick_tiles(Rp, Lp, itemsize, target_bytes=2 * 1024 * 1024):
    """Pick (TR, TL) multiples of (8, 128) aiming at ~target_bytes per tile."""
    # Lane tile: as wide as possible (longer contiguous DMA rows), capped so
    # that 8 rows of it stay under the byte target.
    max_tl = max(128, (target_bytes // (8 * itemsize)) // 128 * 128)
    TL = min(Lp, max_tl)
    # Row tile: fill the remaining byte budget with sublane rows.
    max_tr = max(8, (target_bytes // (TL * itemsize)) // 8 * 8)
    TR = min(Rp, max_tr)
    return TR, TL


def sin_scale_forward(x, scale):
    """x: (N, C, L), scale: (1, C)  ->  (N, C, L);  y = sin(x * scale[:, :, None])."""
    N, C, L = x.shape
    R = N * C

    # Free row-major flatten: row r = n*C + c.
    x2 = x.reshape(R, L)
    # Per-row scale column: row n*C + c -> scale[0, c].
    s_col = jnp.tile(scale.reshape(C, 1), (N, 1))  # (R, 1)

    # Pad up to (8, 128) alignment so every block is dense (unmasked stores).
    Rp = -(-R // 8) * 8
    Lp = -(-L // 128) * 128
    if (Rp, Lp) != (R, L):
        x2 = jnp.pad(x2, ((0, Rp - R), (0, Lp - L)))
        s_col = jnp.pad(s_col, ((0, Rp - R), (0, 0)))

    itemsize = jnp.dtype(x2.dtype).itemsize
    TR, TL = _pick_tiles(Rp, Lp, itemsize)
    grid = (pl.cdiv(Rp, TR), pl.cdiv(Lp, TL))

    grid_spec = pltpu.PrefetchScalarGridSpec(
        num_scalar_prefetch=0,
        grid=grid,
        in_specs=[
            pl.BlockSpec((TR, TL), lambda i, j: (i, j)),
            pl.BlockSpec((TR, 1), lambda i, j: (i, 0)),
        ],
        out_specs=pl.BlockSpec((TR, TL), lambda i, j: (i, j)),
    )
    out = pl.pallas_call(
        sin_scale_kernel,
        out_shape=jax.ShapeDtypeStruct((Rp, Lp), x2.dtype),
        grid_spec=grid_spec,
        compiler_params=pltpu.CompilerParams(
            dimension_semantics=("parallel", "parallel")),
    )(x2, s_col)

    if (Rp, Lp) != (R, L):
        out = out[:R, :L]
    return out.reshape(N, C, L)


# ---------------- pure-JAX reference (correctness cross-check) --------------
def sin_scale_ref(x, scale):
    # == sin(x.transpose(1, 2) * scale).transpose(1, 2)
    return jnp.sin(x * scale[0][None, :, None])


if __name__ == "__main__":
    # Module config: SinScale(in_features=8) applied to x of shape (N, C=8, L=128).
    N, C, L = 2, 8, 128
    key = jax.random.PRNGKey(0)
    kx, ks = jax.random.split(key, 2)
    x = jax.random.normal(kx, (N, C, L), jnp.float32)
    # nn.init.uniform_(self.scale, a=0.1, b=1.0)
    scale = jax.random.uniform(ks, (1, C), jnp.float32, minval=0.1, maxval=1.0)

    out = jax.block_until_ready(sin_scale_forward(x, scale))
    ref = jax.block_until_ready(sin_scale_ref(x, scale))
    assert out.shape == (N, C, L), out.shape
    np.testing.assert_allclose(np.asarray(out), np.asarray(ref),
                               rtol=1e-4, atol=1e-4)
    print("KERNEL_OK")
</pallas_src>

<mosaic_0001>
module attributes {stable_mosaic.version = 11 : i64} {
  func.func @sin_scale_kernel(%arg0: i32, %arg1: i32, %arg2: memref<16x128xf32, #tpu.memory_space<vmem>>, %arg3: memref<16x1xf32, #tpu.memory_space<vmem>>, %arg4: memref<16x128xf32, #tpu.memory_space<vmem>>) attributes {dimension_semantics = [#tpu.dimension_semantics<parallel>, #tpu.dimension_semantics<parallel>], iteration_bounds = array<i64: 1, 1>, scalar_prefetch = 0 : i64, scratch_operands = 0 : i64, tpu.core_type = #tpu.core_type<tc>, window_params = [{transform_indices = @transform_0, window_bounds = array<i64: 16, 128>}, {transform_indices = @transform_1, window_bounds = array<i64: 16, 1>}, {transform_indices = @transform_2, window_bounds = array<i64: 16, 128>}]} {
    %c0 = arith.constant 0 : index
    %c0_0 = arith.constant 0 : index
    %0 = vector.load %arg2[%c0, %c0_0] : memref<16x128xf32, #tpu.memory_space<vmem>>, vector<16x128xf32>
    %c0_1 = arith.constant 0 : index
    %c0_2 = arith.constant 0 : index
    %1 = vector.load %arg3[%c0_1, %c0_2] : memref<16x1xf32, #tpu.memory_space<vmem>>, vector<16x1xf32>
    %2 = vector.broadcast %1 : vector<16x1xf32> to vector<16x128xf32>
    %3 = arith.mulf %0, %2 : vector<16x128xf32>
    %4 = math.sin %3 : vector<16x128xf32>
    %c0_3 = arith.constant 0 : index
    %c0_4 = arith.constant 0 : index
    %5 = vector.load %arg4[%c0_3, %c0_4] : memref<16x128xf32, #tpu.memory_space<vmem>>, vector<16x128xf32>
    tpu.vector_store %arg4[%c0_3, %c0_4], %4 {strides = array<i32>} : memref<16x128xf32, #tpu.memory_space<vmem>>, vector<16x128xf32>,
    return
  }
  func.func @transform_0(%arg0: i32, %arg1: i32) -> (i32, i32) {
    %c0_i32 = arith.constant 0 : i32
    return %arg0, %arg1 : i32, i32
  }
  func.func @transform_1(%arg0: i32, %arg1: i32) -> (i32, i32) {
    %c0_i32 = arith.constant 0 : i32
    %c0_i32_0 = arith.constant 0 : i32
    return %arg0, %c0_i32 : i32, i32
  }
  func.func @transform_2(%arg0: i32, %arg1: i32) -> (i32, i32) {
    %c0_i32 = arith.constant 0 : i32
    return %arg0, %arg1 : i32, i32
  }
}

</mosaic_0001>

<bundles_post_ra>
// kernel: tpu_custom_call.1
= control target key start
LH: loop header
LB: loop body
LE: loop exit
PB: predicated region body
PF: predicated region fallthrough
CT: control target
= control target key end

     0   :  { %v313_v1 = vmov 0   ;;  %s430_s0 = inlined_call_operand.vmem [shape: f32[16,128], index: 0, kind: input, shape index: {}]   ;;  %s431_s1 = inlined_call_operand.vmem [shape: f32[16,1], index: 1, kind: input, shape index: {}]   ;;  %s432_s2 = inlined_call_operand.hbm [shape: f32[16,128], index: 2, kind: output, shape index: {}]  }
   0x1   :  { %v14_v0 = vld [vmem:[%s431_s1] sm:$0xff]  ;;  %280 = vset.pattern.permute.xlu0 %v313_v1  ;;  %v15_v2 = vld [vmem:[%s431_s1 + $0x8] sm:$0xff] }
   0x2   :  { %18 = vperm.xlu0 %280, %v14_v0  }
   0x3   :  { %7 = vsyncpa [#allocation3], 0  ;;  %v12_v3 = vld [vmem:[%s430_s0] sm:$0xff]  ;;  %v13_v6 = vld [vmem:[%s430_s0 + $0x8] sm:$0xff]  ;;  %v314_v25 = vmov 683565275  }
   0x4   :  { %v315_v29 = vmov 2475754826   ;;  %v316_v31 = vmov 2131351028   ;;  %v317_v33 = vmov 2102212464  }
   0x5   :  { %v318_v35 = vmov 920167782   ;;  %v319_v42 = vmov 1326507024   ;;  %s320_s0 = smov [#allocation2]  }
   0x6   :  { %23 = vperm.xlu0 %280, %v15_v2   ;;  %s243_s1 = sshll.u32 %s320_s0, 4  ;;  %s244_s1 = int_to_ptr.vmem [resolvable:$true] %s243_s1 }
   0x7   :  { %s289_s17 = scalar_lea.vmem %s244_s1, 256  ;;  %p294_p1 = scmp.lt.s32.totalorder %s244_s1, %s244_s1 }
   0x8   :  { %p290_p0 = scmp.ne.s32.totalorder %s244_s1, %s289_s17  ;;  %p295_p2 = scmp.lt.s32.totalorder %s289_s17, %s289_s17 }
   0xa   :  { %p296_p3 = por %p295_p2, %p294_p1 }
   0xc   :  { %p297_p4 = pnand %p296_p3, %p290_p0 }
  0x81   :  { %v19_v4 = vpop.permute.xlu0 %18 }
  0x82   :  { %v347_v5 = vmul.f32 %v19_v4, %v12_v3 }
  0x84   :  { %v28_v7 = vand.u32 2147483647, %v347_v5  ;;  %v31_v8 = vand.u32 2139095040, %v347_v5  ;;  %vm30_vm14 = vcmp.lt.s32.totalorder %v347_v5, 0 }
  0x85   :  { %v24_v9 = vpop.permute.xlu0 %23 }
  0x86   :  { %v32_v10 = vshrl.u32 %v31_v8, 23  ;;  %v354_v11 = vmul.f32 %v24_v9, %v13_v6  ;;  %v35_v12 = vand.u32 8388607, %v28_v7  ;;  %vm29_vm15 = vcmp.le.f32.partialorder %v28_v7, 0.7853982 }
  0x88   :  { %v254_v13 = vadd.s32 4294967169, %v32_v10  ;;  %v135_v14 = vand.u32 2139095040, %v354_v11  ;;  %v36_v16 = vor.u32 8388608, %v35_v12  ;;  %v132_v18 = vand.u32 2147483647, %v354_v11 }
  0x8a   :  { %v38_v15 = vadd.s32 1, %v254_v13  ;;  %v136_v17 = vshrl.u32 %v135_v14, 23  ;;  %v360_v23 = vshll.u32 %v36_v16, 8  ;;  %v139_v27 = vand.u32 8388607, %v132_v18 }
  0x8c   :  { %vm39_vm0 = vcmp.gt.s32.totalorder %v38_v15, 0  ;;  %v258_v20 = vadd.s32 4294967169, %v136_v17  ;;  %v140_v57 = vor.u32 8388608, %v139_v27 }
  0x8d   :  { %v40_v19 = vsel %vm39_vm0, %v38_v15, 0  ;;  %vm134_vm0 = vcmp.lt.s32.totalorder %v354_v11, 0 }
  0x8e   :  { %v41_v21 = vshrl.u32 %v40_v19, 5  ;;  %v42_v22 = vand.u32 31, %v40_v19  ;;  %v142_v28 = vadd.s32 1, %v258_v20  ;;  %v180_v8 = vshll.u32 %v140_v57, 8 }
  0x90   :  { %v43_v24 = vsub.s32 32, %v42_v22  ;;  %v45_v26 = vshll.u32 %v314_v25, %v42_v22  ;;  %v48_v30 = vshll.u32 %v315_v29, %v42_v22  ;;  %v51_v32 = vshll.u32 %v316_v31, %v42_v22 }
  0x91   :  { %v54_v34 = vshll.u32 %v317_v33, %v42_v22  ;;  %v57_v36 = vshll.u32 %v318_v35, %v42_v22  ;;  %vm60_vm1 = vcmp.lt.s32.totalorder %v41_v21, 1  ;;  %vm62_vm2 = vcmp.lt.s32.totalorder %v41_v21, 3 }
  0x92   :  { %v46_v37 = vshrl.u32 %v315_v29, %v43_v24  ;;  %v49_v38 = vshrl.u32 %v316_v31, %v43_v24  ;;  %v52_v39 = vshrl.u32 %v317_v33, %v43_v24  ;;  %v44_v40 = vshrl.u32 %v314_v25, %v43_v24 }
  0x93   :  { %v55_v41 = vshrl.u32 %v318_v35, %v43_v24  ;;  %v58_v43 = vshrl.u32 %v319_v42, %v43_v24  ;;  %vm143_vm3 = vcmp.gt.s32.totalorder %v142_v28, 0  ;;  %vm63_vm4 = vcmp.lt.s32.totalorder %v41_v21, 4 }
  0x94   :  { %v47_v44 = vor.u32 %v46_v37, %v45_v26  ;;  %v50_v45 = vor.u32 %v49_v38, %v48_v30  ;;  %v53_v46 = vor.u32 %v52_v39, %v51_v32  ;;  %v144_v49 = vsel %vm143_vm3, %v142_v28, 0 }
  0x95   :  { %v56_v47 = vor.u32 %v55_v41, %v54_v34  ;;  %v59_v48 = vor.u32 %v58_v43, %v57_v36  ;;  %vm61_vm5 = vcmp.lt.s32.totalorder %v41_v21, 2  ;;  %v146_v60 = vand.u32 31, %v144_v49 }
  0x96   :  { %v64_v50 = vsel %vm60_vm1, %v44_v40, %v47_v44  ;;  %v65_v51 = vsel %vm63_vm4, %v53_v46, 2102212464  ;;  %v68_v52 = vsel %vm60_vm1, %v47_v44, %v50_v45  ;;  %v72_v53 = vsel %vm60_vm1, %v50_v45, %v53_v46 }
  0x97   :  { %v66_v54 = vsel %vm62_vm2, %v50_v45, %v65_v51  ;;  %v69_v55 = vsel %vm63_vm4, %v56_v47, 920167782  ;;  %v73_v56 = vsel %vm63_vm4, %v59_v48, 1326507024  ;;  %v145_v4 = vshrl.u32 %v144_v49, 5 }
  0x98   :  { %v70_v58 = vsel %vm62_vm2, %v53_v46, %v69_v55  ;;  %v74_v59 = vsel %vm62_vm2, %v56_v47, %v73_v56  ;;  %v67_v61 = vsel %vm61_vm5, %v64_v50, %v66_v54  ;;  %v147_v6 = vsub.s32 32, %v146_v60 }
  0x99   :  { %v71_v62 = vsel %vm61_vm5, %v68_v52, %v70_v58  ;;  %v75_v63 = vsel %vm61_vm5, %v72_v53, %v74_v59  ;;  %v83_v9 = vmul.u32 %v360_v23, %v67_v61  ;;  %v149_v10 = vshll.u32 %v314_v25, %v146_v60 }
  0x9a   :  { %v373_v0 = vmul.u32.u64.low %v360_v23, %v75_v63  ;;  %v374_v1 = vmul.u32.u64.high %v360_v23, %v75_v63, %v373_v0  ;;  %v377_v2 = vmul.u32.u64.low %v360_v23, %v71_v62  ;;  %v378_v3 = vmul.u32.u64.high %v360_v23, %v71_v62, %v377_v2 }
  0x9b   :  { %v152_v12 = vshll.u32 %v315_v29, %v146_v60  ;;  %v155_v13 = vshll.u32 %v316_v31, %v146_v60  ;;  %v150_v14 = vshrl.u32 %v315_v29, %v147_v6  ;;  %v153_v15 = vshrl.u32 %v316_v31, %v147_v6 }
  0x9c   :  { %v156_v16 = vshrl.u32 %v317_v33, %v147_v6  ;;  %v158_v17 = vshll.u32 %v317_v33, %v146_v60  ;;  %vm85_vm6 = vc.u32 %v374_v1, %v377_v2  ;;  %v86_v19 = vadd.s32 1, %v378_v3 }
  0x9d   :  { %v159_v20 = vshrl.u32 %v318_v35, %v147_v6  ;;  %v161_v21 = vshll.u32 %v318_v35, %v146_v60  ;;  %v151_v22 = vor.u32 %v150_v14, %v149_v10  ;;  %v154_v24 = vor.u32 %v153_v15, %v152_v12 }
  0x9e   :  { %v157_v26 = vor.u32 %v156_v16, %v155_v13  ;;  %v162_v27 = vshrl.u32 %v319_v42, %v147_v6  ;;  %v87_v23 = vsel %vm85_vm6, %v86_v19, %v378_v3  ;;  %vm164_vm7 = vcmp.lt.s32.totalorder %v145_v4, 1 }
  0x9f   :  { %v160_v28 = vor.u32 %v159_v20, %v158_v17  ;;  %vm167_vm8 = vcmp.lt.s32.totalorder %v145_v4, 4  ;;  %v88_v29 = vadd.s32 %v87_v23, %v83_v9  ;;  %vm166_vm9 = vcmp.lt.s32.totalorder %v145_v4, 3 }
  0xa0   :  { %v163_v30 = vor.u32 %v162_v27, %v161_v21  ;;  %v169_v31 = vsel %vm167_vm8, %v157_v26, 2102212464  ;;  %v148_v32 = vshrl.u32 %v314_v25, %v147_v6  ;;  %v172_v33 = vsel %vm164_vm7, %v151_v22, %v154_v24 }
  0xa1   :  { %v173_v34 = vsel %vm167_vm8, %v160_v28, 920167782  ;;  %v176_v36 = vsel %vm164_vm7, %v154_v24, %v157_v26  ;;  %v89_v37 = vadd.s32 536870912, %v88_v29  ;;  %vm165_vm10 = vcmp.lt.s32.totalorder %v145_v4, 2 }
  0xa2   :  { %v174_v35 = vsel %vm166_vm9, %v157_v26, %v173_v34  ;;  %v177_v38 = vsel %vm167_vm8, %v163_v30, 1326507024  ;;  %v168_v39 = vsel %vm164_vm7, %v148_v32, %v151_v22  ;;  %v170_v40 = vsel %vm166_vm9, %v154_v24, %v169_v31 }
  0xa3   :  { %v175_v41 = vsel %vm165_vm10, %v172_v33, %v174_v35  ;;  %v178_v42 = vsel %vm166_vm9, %v160_v28, %v177_v38  ;;  %v90_v43 = vshrl.u32 %v89_v37, 30  ;;  %v171_v49 = vsel %vm165_vm10, %v168_v39, %v170_v40 }
  0xa4   :  { %v179_v44 = vsel %vm165_vm10, %v176_v36, %v178_v42  ;;  %v388_v45 = vmul.u32.u64.low %v180_v8, %v175_v41  ;;  %v389_v46 = vmul.u32.u64.high %v180_v8, %v175_v41, %v388_v45  ;;  %v187_v52 = vmul.u32 %v180_v8, %v171_v49 }
  0xa5   :  { %v391_v47 = vmul.u32.u64.low %v180_v8, %v179_v44  ;;  %v392_v48 = vmul.u32.u64.high %v180_v8, %v179_v44, %v391_v47  ;;  %v91_v25 = vshll.u32 %v90_v43, 30  ;;  %v84_v0 = vadd.s32 %v377_v2, %v374_v1 }
  0xa6   :  { %v190_v51 = vadd.s32 1, %v389_v46  ;;  %v114_v22 = vsub.s32 4, %v90_v43  ;;  %vm407_vm1 = vcmp.le.f32.partialorder %v132_v18, 0.7853982  ;;  %vm120_vm5 = vweird.f32 %v347_v5 }
  0xa7   :  { %v92_v50 = vsub.s32 %v88_v29, %v91_v25  ;;  %vm189_vm11 = vc.u32 %v392_v48, %v388_v45  ;;  %v188_v1 = vadd.s32 %v388_v45, %v392_v48  ;;  %vm224_vm9 = vweird.f32 %v354_v11 }
  0xa8   :  { %v191_v54 = vsel %vm189_vm11, %v190_v51, %v389_v46  ;;  %v115_v31 = vsel %vm30_vm14, %v114_v22, %v90_v43 }
  0xa9   :  { %v94_v53 = vsub.s32 0, %v92_v50  ;;  %v192_v55 = vadd.s32 %v191_v54, %v187_v52  ;;  %v117_v36 = vsel %vm29_vm15, 0, %v115_v31 }
  0xaa   :  { %v121_v39 = vadd.s32 3, %v117_v36 }
  0xab   :  { %v255_v56 = vmin.u32 %v94_v53, %v92_v50  ;;  %v193_v57 = vadd.s32 536870912, %v192_v55 }
  0xac   :  { %v122_v44 = vand.u32 3, %v121_v39 }
  0xad   :  { %v96_v58 = vclz %v255_v56  ;;  %v194_v59 = vshrl.u32 %v193_v57, 30 }
  0xae   :  { %vm127_vm2 = vcmp.eq.s32.totalorder %v122_v44, 2  ;;  %vm124_vm3 = vcmp.eq.s32.totalorder %v122_v44, 0  ;;  %vm123_vm4 = vcmp.lt.s32.totalorder %v122_v44, 2 }
  0xaf   :  { %v256_v60 = vadd.s32 4294967294, %v96_v58  ;;  %v195_v61 = vshll.u32 %v194_v59, 30  ;;  %v218_v41 = vsub.s32 4, %v194_v59 }
  0xb1   :  { %vm257_vm12 = vcmp.lt.s32.totalorder %v256_v60, 0  ;;  %v196_v63 = vsub.s32 %v192_v55, %v195_v61  ;;  %v219_v45 = vsel %vm134_vm0, %v218_v41, %v194_v59 }
  0xb2   :  { %v99_v62 = vsel %vm257_vm12, 0, %v256_v60  ;;  %v221_v49 = vsel %vm407_vm1, 0, %v219_v45 }
  0xb3   :  { %v100_v3 = vsub.s32 32, %v99_v62  ;;  %v104_v4 = vsub.s32 4294967266, %v99_v62  ;;  %v198_v6 = vsub.s32 0, %v196_v63  ;;  %v101_v8 = vshll.u32 %v92_v50, %v99_v62 }
  0xb4   :  { %v225_v52 = vadd.s32 3, %v221_v49 }
  0xb5   :  { %v102_v9 = vshrl.u32 %v84_v0, %v100_v3  ;;  %v105_v10 = vadd.s32 127, %v104_v4  ;;  %v259_v12 = vmin.u32 %v198_v6, %v196_v63 }
  0xb6   :  { %v226_v55 = vand.u32 3, %v225_v52 }
  0xb7   :  { %v103_v13 = vor.u32 %v102_v9, %v101_v8  ;;  %v106_v14 = vshll.u32 %v105_v10, 23  ;;  %v200_v15 = vclz %v259_v12 }
  0xb8   :  { %vm231_vm6 = vcmp.eq.s32.totalorder %v226_v55, 2  ;;  %vm228_vm7 = vcmp.eq.s32.totalorder %v226_v55, 0  ;;  %vm227_vm8 = vcmp.lt.s32.totalorder %v226_v55, 2 }
  0xb9   :  { %v107_v16 = vor.u32 4788187, %v106_v14  ;;  %v260_v17 = vadd.s32 4294967294, %v200_v15  ;;  %v110_v20 = vcvt.s32.f32 %v103_v13 }
  0xbb   :  { %v108_v19 = vand.u32 2147483647, %v107_v16  ;;  %vm261_vm13 = vcmp.lt.s32.totalorder %v260_v17, 0 }
  0xbc   :  { %v203_v24 = vsel %vm261_vm13, 0, %v260_v17 }
  0xbd   :  { %v111_v21 = vmul.f32 %v110_v20, %v108_v19  ;;  %v204_v2 = vsub.s32 32, %v203_v24  ;;  %v208_v26 = vsub.s32 4294967266, %v203_v24  ;;  %v205_v23 = vshll.u32 %v196_v63, %v203_v24 }
  0xbf   :  { %v112_v27 = vxor.u32 2147483648, %v111_v21  ;;  %v206_v28 = vshrl.u32 %v188_v1, %v204_v2  ;;  %v209_v29 = vadd.s32 127, %v208_v26 }
  0xc1   :  { %v113_v30 = vsel %vm30_vm14, %v112_v27, %v111_v21  ;;  %v207_v33 = vor.u32 %v206_v28, %v205_v23  ;;  %v210_v34 = vshll.u32 %v209_v29, 23 }
  0xc2   :  { %v116_v32 = vsel %vm29_vm15, %v347_v5, %v113_v30 }
  0xc3   :  { %281 = vcosq.f32 %v116_v32  ;;  %v211_v37 = vor.u32 4788187, %v210_v34  ;;  %v214_v38 = vcvt.s32.f32 %v207_v33 }
  0xc4   :  { %283 = vsinq.f32 %v116_v32 }
  0xc5   :  { %v212_v35 = vand.u32 2147483647, %v211_v37 }
  0xc7   :  { %v215_v40 = vmul.f32 %v214_v38, %v212_v35 }
  0xc9   :  { %v216_v42 = vxor.u32 2147483648, %v215_v40 }
  0xcb   :  { %v217_v43 = vsel %vm134_vm0, %v216_v42, %v215_v40 }
  0xcc   :  { %v220_v47 = vsel %vm407_vm1, %v354_v11, %v217_v43 }
  0xcd   :  { %v282_v46 = vpop.eup %281  ;;  %285 = vcosq.f32 %v220_v47 }
  0xce   :  { %v284_v48 = vpop.eup %283  ;;  %v128_v25 = vxor.u32 2147483648, %v282_v46  ;;  %287 = vsinq.f32 %v220_v47 }
  0xcf   :  { %v125_v50 = vxor.u32 2147483648, %v284_v48 }
  0xd0   :  { %v129_v18 = vsel %vm127_vm2, %v128_v25, %v284_v48 }
  0xd1   :  { %v126_v51 = vsel %vm124_vm3, %v282_v46, %v125_v50 }
  0xd2   :  { %v130_v53 = vsel %vm123_vm4, %v126_v51, %v129_v18 }
  0xd3   :  { %v131_v54 = vsel %vm120_vm5, nan, %v130_v53 }
  0xd4   :  { %236 = vst [vmem:[#allocation2] sm:$0xff] %v131_v54 }
  0xd7   :  { %v286_v56 = vpop.eup %285 }
  0xd8   :  { %v288_v57 = vpop.eup %287  ;;  %v232_v58 = vxor.u32 2147483648, %v286_v56 }
  0xd9   :  { %v229_v59 = vxor.u32 2147483648, %v288_v57 }
  0xda   :  { %v233_v60 = vsel %vm231_vm6, %v232_v58, %v288_v57 }
  0xdb   :  { %v230_v61 = vsel %vm228_vm7, %v286_v56, %v229_v59 }
  0xdc   :  { %v234_v62 = vsel %vm227_vm8, %v230_v61, %v233_v60 }
  0xdd   :  { %v235_v5 = vsel %vm224_vm9, nan, %v234_v62 }
  0xde   :  { %237 = vst [vmem:[#allocation2 + $0x8] sm:$0xff] %v235_v5 }
  0xdf   :  { %300 = shalt.err (!%p297_p4)
}
  0xe0   :  { %s301_s20 = scalar_lea.hbm %s432_s2, 256 }
  0xe1   :  { %p302_p5 = scmp.ne.s32.totalorder %s432_s2, %s301_s20  ;;  %p305_p6 = scmp.lt.u32.totalorder %s301_s20, %s432_s2 }
  0xe3   :  { %p307_p7 = pnand %p305_p6, %p302_p5 }
  0xe5   :  { %310 = shalt.err (!%p307_p7)
}
  0xe6   :  { %s321_s25 = smov 128   ;;  %s322_s26 = smov 8  }
  0xe7   :  { %249 = dma.vmem_to_hbm [thread:$0]  %s244_s1, 256, %s432_s2, [#allocation3], %s321_s25, %s321_s25, %s322_s26  }
  0xe8   :  { %311 = dma.done.wait [#allocation3], 256  }
  0xe9   :  { %312 = vsyncadd [#allocation3], 4294967040 }
  0xea   :  { %253 = vsyncpa [#allocation3], 1 }

</bundles_post_ra>
